<compile_context>
chip_gen: v7x
topology: tpu7x:2x2x1
jax: 0.10.0
libtpu: 0.0.40
codegen_flags: <defaults>
</compile_context>

<pallas_src>
import types

import jax
import jax.numpy as jnp
from jax.experimental import pallas as pl
from jax.experimental.pallas import tpu as pltpu

MAX_DETECTION_POINTS = 16   # small k for the synthetic setup (real effdet uses 5000)
_MXU_MIN_C = 32             # below this contraction depth the MXU is mostly zero padding
_HEAD_OUT_DTYPE = jnp.bfloat16   # head outputs stored narrow; f32 only in registers


def _round_up(v, m):
    return ((v + m - 1) // m) * m


def _vmem_budget():
    """Generation-aware VMEM sizing: ~cap/4 working budget for the pipelined
    blocks (capped at 32 MiB) and ~cap/2 scoped limit (capped at 64 MiB).
    v7x (64 MiB physical) -> 16/32 MiB; v5e/v6e (128 MiB) -> 32/64 MiB."""
    try:
        cap = int(pltpu.get_tpu_info().vmem_capacity_bytes)
    except Exception:
        cap = 64 * 1024 * 1024
    budget = min(32 * 1024 * 1024, cap // 4)
    limit = min(64 * 1024 * 1024, cap // 2)
    return budget, limit


# -------------------------------------------------------------------------
# Pallas kernel 1: fused (class + box) 1x1-conv prediction heads, all levels,
# tiled over the pixel dimension, two lane-dense bf16 outputs.
# -------------------------------------------------------------------------
def _fused_head_kernel(lvl_ids_ref, x_ref, w_ref, b_ref, cls_ref, box_ref):
    """One M-tile of the fused heads for one pyramid level.

    x_ref:   (TM, C)        activations (bf16 on the MXU path, f32 otherwise)
    w_ref:   (1, C, OCt)    fused [cls_pad | box_pad] weights of this tile's level
    b_ref:   (1, 1, OCt)    fused bias (f32)
    cls_ref: (TM, OCc_pad)  bf16, lane-dense
    box_ref: (TM, OCb_pad)  bf16, lane-dense
    """
    del lvl_ids_ref  # only used by the index_maps
    x = x_ref[...]
    w = w_ref[0]
    c_in = x.shape[1]
    if c_in >= _MXU_MIN_C:
        # MXU path: bf16 operands, f32 accumulation.
        acc = jnp.dot(x, w, preferred_element_type=jnp.float32)
    else:
        # Tiny contraction depth -> VPU broadcast-FMAs in f32 (v5e has no bf16 VPU).
        xf = x.astype(jnp.float32)
        wf = w.astype(jnp.float32)
        acc = xf[:, 0:1] * wf[0:1, :]
        for c in range(1, c_in):
            acc = acc + xf[:, c:c + 1] * wf[c:c + 1, :]
    acc = acc + b_ref[0].astype(jnp.float32)
    occ = cls_ref.shape[1]                      # 128-aligned split -> free vreg slice
    cls_ref[...] = acc[:, :occ].astype(cls_ref.dtype)
    box_ref[...] = acc[:, occ:].astype(box_ref.dtype)


def _choose_tile_m(per_level_m, c_in, oc_total, x_itemsize, out_itemsize, budget):
    """Largest pow-2 M-tile, capped at 512 to bound per-level padding waste
    (grid-step overhead is negligible), shrunk until the double-buffered
    input+output blocks fit the chip-appropriate VMEM budget."""
    tm = 512
    per_row = c_in * x_itemsize + oc_total * out_itemsize
    while tm > 8 and 2 * tm * per_row > budget:
        tm //= 2
    cap = max(8, int(pl.next_power_of_2(max(per_level_m))))
    return max(8, min(tm, cap))


def run_fused_heads(feat_packed, level_ids, w_fused, b_fused,
                    oc_cls_pad, oc_box_pad, *, tile_m, vmem_limit):
    """feat_packed: (Mp, C) packed/padded per-level pixel rows (head dtype).
    level_ids: (num_tiles,) int32 level id per M-tile (scalar prefetch).
    w_fused: (L, C, OCt), b_fused: (L, 1, OCt) with OCt = oc_cls_pad + oc_box_pad.
    Returns (cls (Mp, oc_cls_pad), box (Mp, oc_box_pad)), both bf16."""
    Mp, C = feat_packed.shape
    L, _, OCt = w_fused.shape
    assert OCt == oc_cls_pad + oc_box_pad
    num_tiles = Mp // tile_m
    assert num_tiles * tile_m == Mp and level_ids.shape == (num_tiles,)

    out_itemsize = jnp.dtype(_HEAD_OUT_DTYPE).itemsize
    cost = pl.CostEstimate(
        flops=2 * Mp * C * OCt,
        transcendentals=0,
        bytes_accessed=int(feat_packed.size * feat_packed.dtype.itemsize
                           + w_fused.size * w_fused.dtype.itemsize
                           + b_fused.size * 4 + Mp * OCt * out_itemsize),
    )

    grid_spec = pltpu.PrefetchScalarGridSpec(
        num_scalar_prefetch=1,
        grid=(num_tiles,),
        in_specs=[
            pl.BlockSpec((tile_m, C), lambda i, lv: (i, 0)),
            # Weights/bias only change at level boundaries (L times over the grid).
            pl.BlockSpec((1, C, OCt), lambda i, lv: (lv[i], 0, 0)),
            pl.BlockSpec((1, 1, OCt), lambda i, lv: (lv[i], 0, 0)),
        ],
        out_specs=[
            pl.BlockSpec((tile_m, oc_cls_pad), lambda i, lv: (i, 0)),
            pl.BlockSpec((tile_m, oc_box_pad), lambda i, lv: (i, 0)),
        ],
    )
    return pl.pallas_call(
        _fused_head_kernel,
        out_shape=(jax.ShapeDtypeStruct((Mp, oc_cls_pad), _HEAD_OUT_DTYPE),
                   jax.ShapeDtypeStruct((Mp, oc_box_pad), _HEAD_OUT_DTYPE)),
        grid_spec=grid_spec,
        compiler_params=pltpu.CompilerParams(
            dimension_semantics=("parallel",),
            vmem_limit_bytes=int(vmem_limit),
        ),
        cost_estimate=cost,
    )(level_ids, feat_packed, w_fused, b_fused)


# -------------------------------------------------------------------------
# Pallas kernel 2: post-top-k BOX gather, one grid step per batch image,
# manual double-buffered row DMAs from HBM (pl.ANY) driven by SMEM indices.
# (The class-logit gather is gone: top_k already returned those values.)
# -------------------------------------------------------------------------
def _make_box_gather_kernel(n_rows, k_det):
    def kernel(ind_ref, box_hbm, out_ref, buf, sem):
        b = pl.program_id(0)

        def issue(k, slot):
            row = b * n_rows + ind_ref[b * k_det + k]
            pltpu.make_async_copy(box_hbm.at[pl.ds(row, 1), :],
                                  buf.at[pl.ds(k, 1), :],
                                  sem.at[slot]).start()

        issue(0, 0)

        @pl.loop(0, k_det)
        def _(k):
            slot = k & 1

            @pl.when(k + 1 < k_det)
            def _():
                issue(k + 1, 1 - slot)

            # wait for the copy that targeted buf row k (same shape as started)
            pltpu.make_async_copy(box_hbm.at[pl.ds(0, 1), :],
                                  buf.at[pl.ds(k, 1), :],
                                  sem.at[slot]).wait()

        out_ref[0, :, :] = buf[...]

    return kernel


def run_box_gather(box_all, indices_all):
    """box_all: (B, N, 4) f32; indices_all: (B, K) int32 row indices into dim 1.
    Returns gathered (B, K, 4)."""
    B, N, W = box_all.shape
    K = indices_all.shape[1]
    box_flat = box_all.reshape(B * N, W)
    # 1D scalar-prefetch indices avoid the SMEM 8-row padding of a (B, K) layout.
    ind_flat = indices_all.astype(jnp.int32).reshape(B * K)

    grid_spec = pltpu.PrefetchScalarGridSpec(
        num_scalar_prefetch=1,
        grid=(B,),
        in_specs=[pl.BlockSpec(memory_space=pl.ANY)],
        out_specs=pl.BlockSpec((1, K, W), lambda b, ind: (b, 0, 0)),
        scratch_shapes=[pltpu.VMEM((K, W), box_flat.dtype),
                        pltpu.SemaphoreType.DMA((2,))],
    )
    return pl.pallas_call(
        _make_box_gather_kernel(N, K),
        out_shape=jax.ShapeDtypeStruct((B, K, W), box_flat.dtype),
        grid_spec=grid_spec,
        compiler_params=pltpu.CompilerParams(
            dimension_semantics=("arbitrary",)),
    )(ind_flat, box_flat)


# -------------------------------------------------------------------------
# DetBenchEvalMultiScale (synthetic model + _post_process)
# -------------------------------------------------------------------------
class DetBenchEvalMultiScale:
    def __init__(self, config, key, multiscale=(1.0,)):
        self.config = config
        self.multiscale = list(multiscale)
        self.size = config.image_size
        # TODO(synk): Anchors(...) per scale requires the (unprovided) Anchors class.

        A, NC, C, L = (config.num_anchors, config.num_classes,
                       config.in_chans, config.num_levels)
        self.oc_cls = A * NC
        self.oc_box = A * 4
        # cls and box segments padded to 128 SEPARATELY so both the in-kernel
        # split and every downstream slice are lane-aligned.
        self.oc_cls_pad = _round_up(self.oc_cls, 128)
        self.oc_box_pad = _round_up(self.oc_box, 128)
        self.oc_total = self.oc_cls_pad + self.oc_box_pad
        self.head_in_dtype = jnp.bfloat16 if C >= _MXU_MIN_C else jnp.float32

        w_list, b_list = [], []
        for _ in range(L):
            key, k1, k2, k3, k4 = jax.random.split(key, 5)
            w_cls = 0.1 * jax.random.normal(k1, (C, self.oc_cls), jnp.float32)
            b_cls = 0.1 * jax.random.normal(k2, (1, self.oc_cls), jnp.float32)
            w_box = 0.1 * jax.random.normal(k3, (C, self.oc_box), jnp.float32)
            b_box = 0.1 * jax.random.normal(k4, (1, self.oc_box), jnp.float32)
            w = jnp.concatenate(
                [jnp.pad(w_cls, ((0, 0), (0, self.oc_cls_pad - self.oc_cls))),
                 jnp.pad(w_box, ((0, 0), (0, self.oc_box_pad - self.oc_box)))], axis=1)
            b = jnp.concatenate(
                [jnp.pad(b_cls, ((0, 0), (0, self.oc_cls_pad - self.oc_cls))),
                 jnp.pad(b_box, ((0, 0), (0, self.oc_box_pad - self.oc_box)))], axis=1)
            w_list.append(w)
            b_list.append(b)
        # Weights pre-cast to the head compute dtype once at init.
        self.w_fused = jnp.stack(w_list).astype(self.head_in_dtype)  # (L, C, OCt)
        self.b_fused = jnp.stack(b_list)                              # (L, 1, OCt) f32

    # ------ synthetic "model": per-level features + fused Pallas heads ------
    def _model(self, x):
        cfg = self.config
        B, C, H, W = x.shape
        A, NC = cfg.num_anchors, cfg.num_classes

        # NHWC once; cast to the head compute dtype early so all the pad/concat
        # plumbing below moves narrow data on the MXU path.
        x_nhwc = jnp.transpose(x, (0, 2, 3, 1)).astype(self.head_in_dtype)

        chunks, meta, per_level_m = [], [], []
        for lvl in range(cfg.num_levels):
            stride = 2 ** (lvl + 1)
            feat = x_nhwc[:, ::stride, ::stride, :]       # (B, Hl, Wl, C)
            Hl, Wl = feat.shape[1], feat.shape[2]
            m = B * Hl * Wl
            per_level_m.append(m)
            meta.append((m, Hl, Wl))
            chunks.append(feat.reshape(m, C))

        budget, vmem_limit = _vmem_budget()
        x_itemsize = jnp.dtype(self.head_in_dtype).itemsize
        out_itemsize = jnp.dtype(_HEAD_OUT_DTYPE).itemsize
        tile_m = _choose_tile_m(per_level_m, C, self.oc_total,
                                x_itemsize, out_itemsize, budget)

        padded, level_ids = [], []
        for lvl, flat in enumerate(chunks):
            m = flat.shape[0]
            n_tiles = pl.cdiv(m, tile_m)
            m_pad = n_tiles * tile_m
            if m_pad > m:
                flat = jnp.pad(flat, ((0, m_pad - m), (0, 0)))
            padded.append(flat)
            level_ids += [lvl] * n_tiles
        feat_packed = jnp.concatenate(padded, axis=0)
        level_ids = jnp.asarray(level_ids, jnp.int32)

        cls_packed, box_packed = run_fused_heads(
            feat_packed, level_ids, self.w_fused, self.b_fused,
            self.oc_cls_pad, self.oc_box_pad, tile_m=tile_m, vmem_limit=vmem_limit)

        # identical to PyTorch: permute(0,2,3,1).reshape(B, H*W*A, num_classes)
        # TODO(synk): the per-level slice/reshape/concat stays in XLA layout plumbing.
        cls_outputs, box_outputs = [], []
        off = 0
        for (m, Hl, Wl) in meta:
            cls_outputs.append(
                cls_packed[off:off + m, :self.oc_cls].reshape(B, Hl * Wl * A, NC))
            box_outputs.append(
                box_packed[off:off + m, :self.oc_box].reshape(B, Hl * Wl * A, 4))
            off += pl.cdiv(m, tile_m) * tile_m
        return cls_outputs, box_outputs

    # ------ _post_process ------
    def _post_process(self, cls_outputs, box_outputs):
        B = cls_outputs[0].shape[0]
        nc = self.config.num_classes
        cls_all = jnp.concatenate(cls_outputs, axis=1)   # (B, Ntot, NC) bf16
        box_all = jnp.concatenate(box_outputs, axis=1)   # (B, Ntot, 4)  bf16

        # TODO(synk): top-k itself stays in XLA (jax.lax.top_k); only the box
        # row gather runs in Pallas.  The top_k VALUES are exactly
        # cls_all[b, ind, cla], so the PyTorch class-logit gather is not redone.
        topk_vals, topk_idx = jax.lax.top_k(cls_all.reshape(B, -1),
                                            MAX_DETECTION_POINTS)
        indices_all = (topk_idx // nc).astype(jnp.int32)
        classes_all = (topk_idx % nc).astype(jnp.int32)

        cls_sel = topk_vals.astype(jnp.float32)[..., None]
        box_sel = run_box_gather(box_all.astype(jnp.float32), indices_all)
        return cls_sel, box_sel, indices_all, classes_all

    # ------ forward ------
    def __call__(self, x, image_scales, scale):
        if scale not in self.multiscale:
            print('scale not in 0.5,0.625,0.75,0.875,1.0,1.125,1.25,1.375,1.5')
            return None
        class_out, box_out = self._model(x)
        class_out, box_out, indices, classes = self._post_process(class_out, box_out)
        # TODO(synk): generate_detections (anchor decode + per-image NMS) has no
        # reference implementation in the provided snippet; return the
        # post-processed per-image tensors instead of stacked detections.
        return class_out, box_out, indices, classes


# -------------------------------------------------------------------------
# pure-JAX reference (correctness check only); mirrors the kernel's numerics
# (f32 accumulate, bf16 head-output storage) but uses the PyTorch-style
# double gather to validate the top_k-values shortcut.
# -------------------------------------------------------------------------
def _reference_forward(bench, x):
    cfg = bench.config
    B, C, H, W = x.shape
    A, NC = cfg.num_anchors, cfg.num_classes
    x_nhwc = jnp.transpose(x, (0, 2, 3, 1))
    cls_outs, box_outs = [], []
    for lvl in range(cfg.num_levels):
        stride = 2 ** (lvl + 1)
        feat = x_nhwc[:, ::stride, ::stride, :]
        Hl, Wl = feat.shape[1], feat.shape[2]
        flat = feat.reshape(B * Hl * Wl, C).astype(jnp.float32)
        w = bench.w_fused[lvl].astype(jnp.float32)
        if C >= _MXU_MIN_C:
            out = jnp.dot(flat.astype(jnp.bfloat16), w.astype(jnp.bfloat16),
                          preferred_element_type=jnp.float32)
        else:
            out = flat[:, 0:1] * w[0:1, :]
            for c in range(1, C):
                out = out + flat[:, c:c + 1] * w[c:c + 1, :]
        out = (out + bench.b_fused[lvl]).astype(jnp.bfloat16)   # kernel stores bf16
        cls_outs.append(out[:, :bench.oc_cls].reshape(B, Hl * Wl * A, NC))
        box_outs.append(out[:, bench.oc_cls_pad:bench.oc_cls_pad + bench.oc_box]
                        .reshape(B, Hl * Wl * A, 4))
    cls_all = jnp.concatenate(cls_outs, axis=1)
    box_all = jnp.concatenate(box_outs, axis=1)
    _, idx = jax.lax.top_k(cls_all.reshape(B, -1), MAX_DETECTION_POINTS)
    ind = idx // NC
    cla = idx % NC
    box_sel = jnp.take_along_axis(box_all, ind[..., None], axis=1)
    cls_rows = jnp.take_along_axis(cls_all, ind[..., None], axis=1)
    cls_sel = jnp.take_along_axis(cls_rows, cla[..., None], axis=2)
    return (cls_sel.astype(jnp.float32), box_sel.astype(jnp.float32), ind, cla)


# -------------------------------------------------------------------------
if __name__ == "__main__":
    config = types.SimpleNamespace(
        num_classes=4,
        num_levels=3,
        num_anchors=3,
        image_size=16,
        in_chans=4,
    )

    key = jax.random.PRNGKey(0)
    key, kx, kb = jax.random.split(key, 3)

    B, C, H, W = 2, 4, 16, 16
    x = jax.random.normal(kx, (B, C, H, W), jnp.float32)
    image_scales = jnp.ones((B,), jnp.float32)

    bench = DetBenchEvalMultiScale(config, kb, multiscale=[1.0])
    out = bench(x, image_scales, scale=1.0)
    jax.block_until_ready(out)

    cls_sel, box_sel, indices, classes = out
    assert cls_sel.shape == (B, MAX_DETECTION_POINTS, 1)
    assert box_sel.shape == (B, MAX_DETECTION_POINTS, 4)
    assert indices.shape == (B, MAX_DETECTION_POINTS)
    assert classes.shape == (B, MAX_DETECTION_POINTS)

    ref_cls, ref_box, ref_ind, ref_cla = _reference_forward(bench, x)
    # head outputs are stored in bf16, so compare at bf16-level tolerance
    assert jnp.allclose(cls_sel, ref_cls, atol=2e-2, rtol=2e-2)
    assert jnp.allclose(box_sel, ref_box, atol=2e-2, rtol=2e-2)
    print("KERNEL_OK")
</pallas_src>

<mosaic_0001>
module attributes {stable_mosaic.version = 11 : i64} {
  func.func @_fused_head_kernel(%arg0: i32, %arg1: memref<3xi32, #tpu.memory_space<smem>>, %arg2: memref<128x4xf32, #tpu.memory_space<vmem>>, %arg3: memref<1x4x256xf32, #tpu.memory_space<vmem>>, %arg4: memref<1x1x256xf32, #tpu.memory_space<vmem>>, %arg5: memref<128x128xbf16, #tpu.memory_space<vmem>>, %arg6: memref<128x128xbf16, #tpu.memory_space<vmem>>) attributes {dimension_semantics = [#tpu.dimension_semantics<parallel>], iteration_bounds = array<i64: 3>, scalar_prefetch = 1 : i64, scratch_operands = 0 : i64, tpu.core_type = #tpu.core_type<tc>, window_params = [{transform_indices = @transform_0, window_bounds = array<i64: 128, 4>}, {transform_indices = @transform_1, window_bounds = array<i64: 1, 4, 256>}, {transform_indices = @transform_2, window_bounds = array<i64: 1, 1, 256>}, {transform_indices = @transform_3, window_bounds = array<i64: 128, 128>}, {transform_indices = @transform_4, window_bounds = array<i64: 128, 128>}]} {
    %c0 = arith.constant 0 : index
    %c0_0 = arith.constant 0 : index
    %0 = vector.load %arg2[%c0, %c0_0] : memref<128x4xf32, #tpu.memory_space<vmem>>, vector<128x4xf32>
    %c0_1 = arith.constant 0 : index
    %c0_2 = arith.constant 0 : index
    %c0_3 = arith.constant 0 : index
    %1 = vector.load %arg3[%c0_1, %c0_2, %c0_3] : memref<1x4x256xf32, #tpu.memory_space<vmem>>, vector<1x4x256xf32>
    %2 = vector.shape_cast %1 : vector<1x4x256xf32> to vector<4x256xf32>
    %3 = vector.extract_strided_slice %0 {offsets = [0, 0], sizes = [128, 1], strides = [1, 1]} : vector<128x4xf32> to vector<128x1xf32>
    %4 = vector.extract_strided_slice %2 {offsets = [0, 0], sizes = [1, 256], strides = [1, 1]} : vector<4x256xf32> to vector<1x256xf32>
    %5 = vector.broadcast %3 : vector<128x1xf32> to vector<128x256xf32>
    %6 = vector.broadcast %4 : vector<1x256xf32> to vector<128x256xf32>
    %7 = arith.mulf %5, %6 : vector<128x256xf32>
    %8 = vector.extract_strided_slice %0 {offsets = [0, 1], sizes = [128, 1], strides = [1, 1]} : vector<128x4xf32> to vector<128x1xf32>
    %9 = vector.extract_strided_slice %2 {offsets = [1, 0], sizes = [1, 256], strides = [1, 1]} : vector<4x256xf32> to vector<1x256xf32>
    %10 = vector.broadcast %8 : vector<128x1xf32> to vector<128x256xf32>
    %11 = vector.broadcast %9 : vector<1x256xf32> to vector<128x256xf32>
    %12 = arith.mulf %10, %11 : vector<128x256xf32>
    %13 = arith.addf %7, %12 : vector<128x256xf32>
    %14 = vector.extract_strided_slice %0 {offsets = [0, 2], sizes = [128, 1], strides = [1, 1]} : vector<128x4xf32> to vector<128x1xf32>
    %15 = vector.extract_strided_slice %2 {offsets = [2, 0], sizes = [1, 256], strides = [1, 1]} : vector<4x256xf32> to vector<1x256xf32>
    %16 = vector.broadcast %14 : vector<128x1xf32> to vector<128x256xf32>
    %17 = vector.broadcast %15 : vector<1x256xf32> to vector<128x256xf32>
    %18 = arith.mulf %16, %17 : vector<128x256xf32>
    %19 = arith.addf %13, %18 : vector<128x256xf32>
    %20 = vector.extract_strided_slice %0 {offsets = [0, 3], sizes = [128, 1], strides = [1, 1]} : vector<128x4xf32> to vector<128x1xf32>
    %21 = vector.extract_strided_slice %2 {offsets = [3, 0], sizes = [1, 256], strides = [1, 1]} : vector<4x256xf32> to vector<1x256xf32>
    %22 = vector.broadcast %20 : vector<128x1xf32> to vector<128x256xf32>
    %23 = vector.broadcast %21 : vector<1x256xf32> to vector<128x256xf32>
    %24 = arith.mulf %22, %23 : vector<128x256xf32>
    %25 = arith.addf %19, %24 : vector<128x256xf32>
    %c0_4 = arith.constant 0 : index
    %c0_5 = arith.constant 0 : index
    %c0_6 = arith.constant 0 : index
    %26 = vector.load %arg4[%c0_4, %c0_5, %c0_6] : memref<1x1x256xf32, #tpu.memory_space<vmem>>, vector<1x1x256xf32>
    %27 = vector.shape_cast %26 : vector<1x1x256xf32> to vector<1x256xf32>
    %28 = vector.broadcast %27 : vector<1x256xf32> to vector<128x256xf32>
    %29 = arith.addf %25, %28 : vector<128x256xf32>
    %30 = vector.extract_strided_slice %29 {offsets = [0, 0], sizes = [128, 128], strides = [1, 1]} : vector<128x256xf32> to vector<128x128xf32>
    %31 = arith.truncf %30 : vector<128x128xf32> to vector<128x128xbf16>
    %c0_7 = arith.constant 0 : index
    %c0_8 = arith.constant 0 : index
    %32 = vector.load %arg5[%c0_7, %c0_8] : memref<128x128xbf16, #tpu.memory_space<vmem>>, vector<128x128xbf16>
    tpu.vector_store %arg5[%c0_7, %c0_8], %31 {strides = array<i32>} : memref<128x128xbf16, #tpu.memory_space<vmem>>, vector<128x128xbf16>,
    %33 = vector.extract_strided_slice %29 {offsets = [0, 128], sizes = [128, 128], strides = [1, 1]} : vector<128x256xf32> to vector<128x128xf32>
    %34 = arith.truncf %33 : vector<128x128xf32> to vector<128x128xbf16>
    %c0_9 = arith.constant 0 : index
    %c0_10 = arith.constant 0 : index
    %35 = vector.load %arg6[%c0_9, %c0_10] : memref<128x128xbf16, #tpu.memory_space<vmem>>, vector<128x128xbf16>
    tpu.vector_store %arg6[%c0_9, %c0_10], %34 {strides = array<i32>} : memref<128x128xbf16, #tpu.memory_space<vmem>>, vector<128x128xbf16>,
    return
  }
  func.func @transform_0(%arg0: i32, %arg1: memref<3xi32, #tpu.memory_space<smem>>) -> (i32, i32) {
    %c0_i32 = arith.constant 0 : i32
    %c0_i32_0 = arith.constant 0 : i32
    return %arg0, %c0_i32 : i32, i32
  }
  func.func @transform_1(%arg0: i32, %arg1: memref<3xi32, #tpu.memory_space<smem>>) -> (i32, i32, i32) {
    %0 = arith.index_cast %arg0 : i32 to index
    %1 = memref.load %arg1[%0] : memref<3xi32, #tpu.memory_space<smem>>
    %c0_i32 = arith.constant 0 : i32
    %c0_i32_0 = arith.constant 0 : i32
    %c0_i32_1 = arith.constant 0 : i32
    return %1, %c0_i32, %c0_i32_0 : i32, i32, i32
  }
  func.func @transform_2(%arg0: i32, %arg1: memref<3xi32, #tpu.memory_space<smem>>) -> (i32, i32, i32) {
    %0 = arith.index_cast %arg0 : i32 to index
    %1 = memref.load %arg1[%0] : memref<3xi32, #tpu.memory_space<smem>>
    %c0_i32 = arith.constant 0 : i32
    %c0_i32_0 = arith.constant 0 : i32
    %c0_i32_1 = arith.constant 0 : i32
    return %1, %c0_i32, %c0_i32_0 : i32, i32, i32
  }
  func.func @transform_3(%arg0: i32, %arg1: memref<3xi32, #tpu.memory_space<smem>>) -> (i32, i32) {
    %c0_i32 = arith.constant 0 : i32
    %c0_i32_0 = arith.constant 0 : i32
    return %arg0, %c0_i32 : i32, i32
  }
  func.func @transform_4(%arg0: i32, %arg1: memref<3xi32, #tpu.memory_space<smem>>) -> (i32, i32) {
    %c0_i32 = arith.constant 0 : i32
    %c0_i32_0 = arith.constant 0 : i32
    return %arg0, %c0_i32 : i32, i32
  }
}

</mosaic_0001>

<bundles_post_ra>
// kernel: tpu_custom_call.1
= control target key start
LH: loop header
LB: loop body
LE: loop exit
PB: predicated region body
PF: predicated region fallthrough
CT: control target
= control target key end

     0   :  { %s2315_s0 = inlined_call_operand.vmem [shape: s32[3], index: 0, kind: input, shape index: {}]   ;;  %s2316_s1 = inlined_call_operand.vmem [shape: f32[384,4], index: 1, kind: input, shape index: {}]   ;;  %s2317_s2 = inlined_call_operand.vmem [shape: f32[3,4,256], index: 2, kind: input, shape index: {}]   ;;  %s2318_s3 = inlined_call_operand.vmem [shape: f32[3,1,256], index: 3, kind: input, shape index: {}]   ;;  %s2319_s4 = inlined_call_operand.hbm [shape: bf16[384,128], index: 4, kind: output, shape index: {0}]   ;;  %s2320_s5 = inlined_call_operand.hbm [shape: bf16[384,128], index: 5, kind: output, shape index: {1}]  }
   0x1   :  { %s11_s20 = sshll.u32 %s2315_s0, 4  ;;  %s12_s20 = int_to_ptr.vmem [resolvable:$true] %s11_s20 }
   0x2   :  { %s1451_s21 = scalar_lea.vmem %s12_s20, 16  ;;  %p1456_p1 = scmp.lt.s32.totalorder %s12_s20, %s12_s20 }
   0x3   :  { %p1452_p0 = scmp.ne.s32.totalorder %s12_s20, %s1451_s21  ;;  %p1457_p2 = scmp.lt.s32.totalorder %s1451_s21, %s1451_s21 }
   0x5   :  { %p1458_p3 = por %p1457_p2, %p1456_p1 }
   0x7   :  { %p1459_p4 = pnand %p1458_p3, %p1452_p0 }
   0x9   :  { %1462 = shalt.err (!%p1459_p4)  }
   0xa   :  { %s1561_s22 = smov [#allocation3]  }
   0xb   :  { %14 = dma.vmem_to_smem %s12_s20, 16, %s1561_s22, [#allocation2] }
   0xc   :  { %1535 = dma.done.wait [#allocation2], 16 }
   0xd   :  { %1536 = vsyncadd [#allocation2], 4294967280 }
   0xe   :  { %16 = sfence }
   0xf   :  { %17 = vsyncpa [#allocation5], 0 }
  0x10   :  { %19 = vsyncpa [#allocation5 + $0x1], 0 }
  0x11   :  { %20 = vsyncpa [#allocation7], 0 }
  0x12   :  { %22 = vsyncpa [#allocation7 + $0x1], 0  ;;  %s1603_s23 = smov 0   ;;  %s1605_s0 = smov 0  }
  0x13   :  { %s1607_s24 = smov 0   ;;  %s1609_s25 = smov 0  }
  0x14 LB: > { %s1624_s26 = sadd.s32 4294967295, %s1559_s25   ;;  %s1212_s27 = sadd.s32 4294967294, %s1559_s25   ;;  %s1559_s25 = sphi %s1609_s25, %s2354_s25   ;;  %s1555_s24 = sphi %s1607_s24, %s2353_s24   ;;  %s1551_s0 = sphi %s1605_s0, %s2352_s0   ;;  %s1547_s23 = sphi %s1603_s23, %s2351_s23  }
  0x15   : > { %s1628_s28 = sadd.s32 1, %s1559_s25   ;;  %s117_s29 = sadd.s32 1, %s1555_s24 }
  0x16   : > { %s114_s30 = ssub.s32 %s1559_s25, %s1628_s28  ;;  %p127_p5 = scmp.ne.s32.totalorder %s1555_s24, %s1551_s0 }
  0x17   : > { %p115_p6 = scmp.eq.s32.totalorder %s114_s30, 0  ;;  %p128_p7 = scmp.eq.s32.totalorder %s1624_s26, 2 }
  0x18   : > { %p133_p8 = scmp.ne.s32.totalorder %s1551_s0, %s1547_s23  ;;  %p134_p9 = scmp.eq.s32.totalorder %s1212_s27, 2 }
  0x19   : > { %s1639_s6 = scalar_select %p115_p6, %s1555_s24, %s117_s29  }
  0x1a   : > { %p1641_p10 = por %p128_p7, %p127_p5  ;;  %p1645_p11 = por %p134_p9, %p133_p8 }
  0x1b   : > { %p1215_p12 = scmp.ge.s32.totalorder %s1559_s25, 1  ;;  %p206_p13 = scmp.lt.s32.totalorder %s1559_s25, 4 }
  0x1d   : > { %p207_p0 = pnand %p1215_p12, %p206_p13 }
  0x1f   : > { %210 = sbr.rel (%p207_p0) target bundleno = 350 (0x15e), region = 32 }
  0x26   : > { %s1218_s9 = sshll.u32 %s1624_s26, 4  ;;  %v1562_v0 = vmov 0   ;;  %v1563_v17 = vmov 1   ;;  %v1564_v18 = vmov 2   ;;  %v1565_v19 = vmov 3   ;;  %s254_s14 = sld [smem:[#allocation3 + %s1624_s26]] }
  0x27   : > { %1444 = vset.pattern.permute.xlu1 %v1562_v0  ;;  %1443 = vset.pattern.permute.xlu0 %v1562_v0  ;;  %p249_p1 = scmp.lt.s32.totalorder %s1218_s9, 47  ;;  %v367_v28 = vlaneseq  ;;  %s261_s19 = sld [smem:[#allocation3 + %s1624_s26]] }
  0x28   : > { %s2086_s29 = sand.u32 1, %s1551_s0   ;;  %s1296_s11 = sshll.u32 %s1624_s26, 10 }
  0x29   : > { %s2356_s9 = smov (!%p249_p1, %s1218_s9), 47  ;;  %v1732_v31 = vshrl.u32 %v367_v28, 7  ;;  %s1216_s30 = sshll.u32 %s2086_s29, 6 }
  0x2a   : > { %s1219_s10 = sshll.u32 %s2356_s9, 3  ;;  %s2129_s9 = scalar_lea.vmem [#allocation4], %s1216_s30 }
  0x2b   : > { %s252_s13 = scalar_lea.vmem %s2316_s1, %s1219_s10  ;;  %v1740_v34 = vsub.s32 1, %v1732_v31  ;;  %v487_v35 = vsub.s32 5, %v1732_v31  ;;  %v1744_v36 = vsub.s32 0, %v1732_v31  ;;  %v373_v37 = vsub.s32 4, %v1732_v31  ;;  %s2132_s10 = scalar_lea.vmem [#allocation6], %s1216_s30 }
  0x2c   : > { %v1655_v1 = vld [vmem:[%s252_s13 + $0x10] sm:$0xff]  ;;  %v1657_v2 = vld [vmem:[%s252_s13] sm:$0xff]  ;;  %v1661_v3 = vld [vmem:[%s252_s13 + $0x18] sm:$0xff]  ;;  %p255_p2 = scmp.lt.s32.totalorder %s254_s14, 2  ;;  %s1078_s12 = sshll.u32 %s2129_s9, 4  ;;  %s2233_s12 = int_to_ptr.vmem [resolvable:$true] %s1078_s12 }
  0x2d   : > { %298 = vperm.xlu1 %1444, %v1655_v1   ;;  %288 = vperm.xlu0 %1443, %v1657_v2   ;;  %v1663_v4 = vld [vmem:[%s252_s13 + $0x8] sm:$0xff]  ;;  %v1669_v6 = vld [vmem:[%s252_s13 + $0x20] sm:$0xff]  ;;  %v1673_v7 = vld [vmem:[%s252_s13 + $0x38] sm:$0xff]  ;;  %p262_p3 = scmp.lt.s32.totalorder %s261_s19, 2  ;;  %s2231_s16 = scalar_lea.hbm %s2319_s4, %s1296_s11 }
  0x2e   : > { %v1667_v5 = vld [vmem:[%s252_s13 + $0x28] sm:$0xff]  ;;  %v1675_v8 = vld [vmem:[%s252_s13 + $0x30] sm:$0xff]  ;;  %v1681_v10 = vld [vmem:[%s252_s13 + $0x40] sm:$0xff]  ;;  %s2358_s14 = smov (!%p255_p2, %s254_s14), 2  ;;  %s1566_s21 = smov [#allocation4]  }
  0x2f   : > { %v1679_v9 = vld [vmem:[%s252_s13 + $0x48] sm:$0xff]  ;;  %v280_v11 = vld [vmem:[%s252_s13 + $0x58] sm:$0xff]  ;;  %v1685_v12 = vld [vmem:[%s252_s13 + $0x50] sm:$0xff]  ;;  %s1263_s15 = sshll.u32 %s2358_s14, 3  ;;  %s2360_s19 = smov (!%p262_p3, %s261_s19), 2 }
  0x30   : > { %v282_v13 = vld [vmem:[%s252_s13 + $0x68] sm:$0xff]  ;;  %v281_v14 = vld [vmem:[%s252_s13 + $0x60] sm:$0xff]  ;;  %v284_v15 = vld [vmem:[%s252_s13 + $0x78] sm:$0xff]  ;;  %s259_s18 = scalar_lea.vmem %s2317_s2, %s1263_s15  ;;  %s1222_s20 = sshll.u32 %s2360_s19, 1 }
  0x31   : > { %303 = vperm.xlu1 %1444, %v1661_v3   ;;  %293 = vperm.xlu0 %1443, %v1663_v4   ;;  %v283_v16 = vld [vmem:[%s252_s13 + $0x70] sm:$0xff]  ;;  %v1751_v40 = vld [vmem:[%s259_s18] sm:$0xff]  ;;  %s265_s27 = scalar_lea.vmem %s2318_s3, %s1222_s20  ;;  %s1094_s13 = sshll.u32 %s2132_s10, 4  ;;  %s2240_s13 = int_to_ptr.vmem [resolvable:$true] %s1094_s13 }
  0x32   : > { %v484_v41 = vrot.slane %v1751_v40, %v1740_v34  ;;  %v488_v42 = vrot.slane %v1751_v40, %v487_v35  ;;  %v370_v43 = vrot.slane %v1751_v40, %v1744_v36  ;;  %v374_v44 = vrot.slane %v1751_v40, %v373_v37  ;;  %s2238_s18 = scalar_lea.hbm %s2320_s5, %s1296_s11  ;;  %s1060_s19 = scalar_lea.sflag [#allocation5], %s2086_s29 }
  0x33   : > { %s1463_s20 = scalar_lea.vmem %s2233_s12, 1024  ;;  %s1467_s22 = sshll.u32 %s1566_s21, 4  ;;  %s1468_s22 = int_to_ptr.vmem [resolvable:$false] %s1467_s22 }
  0x34   : > { %v1764_v47 = vrot.slane %v484_v41, %v1740_v34  ;;  %v1767_v48 = vrot.slane %v488_v42, %v1740_v34  ;;  %v1770_v49 = vrot.slane %v370_v43, %v1744_v36  ;;  %v1773_v50 = vrot.slane %v374_v44, %v1744_v36  ;;  %p1464_p4 = scmp.ne.s32.totalorder %s2233_s12, %s1463_s20  ;;  %p1470_p7 = scmp.lt.s32.totalorder %s2233_s12, %s1468_s22 }
  0x35   : > { %313 = vperm.xlu1 %1444, %v1667_v5   ;;  %308 = vperm.xlu0 %1443, %v1669_v6  }
  0x36   : > { %p1465_p5 = pnand %p1464_p4, %p1641_p10 }
  0x38   : > { %p1466_p6 = pneg %p1465_p5 }
  0x39   : > { %323 = vperm.xlu1 %1444, %v1673_v7   ;;  %318 = vperm.xlu0 %1443, %v1675_v8  }
  0x3d   : > { %333 = vperm.xlu1 %1444, %v1679_v9   ;;  %328 = vperm.xlu0 %1443, %v1681_v10  }
  0x41   : > { %343 = vperm.xlu1 %1444, %v280_v11   ;;  %338 = vperm.xlu0 %1443, %v1685_v12  }
  0x45   : > { %353 = vperm.xlu1 %1444, %v282_v13   ;;  %348 = vperm.xlu0 %1443, %v281_v14  }
  0x49   : > { %363 = vperm.xlu1 %1444, %v284_v15   ;;  %358 = vperm.xlu0 %1443, %v283_v16  }
  0x4d   : > { %1446 = vset.pattern.permute.xlu1 %v1563_v17  ;;  %1445 = vset.pattern.permute.xlu0 %v1563_v17 }
  0x4e   : > { %422 = vperm.xlu1 %1446, %v1663_v4   ;;  %418 = vperm.xlu0 %1445, %v1657_v2  }
  0x52   : > { %426 = vperm.xlu1 %1446, %v1655_v1   ;;  %430 = vperm.xlu0 %1445, %v1661_v3  }
  0x56   : > { %434 = vperm.xlu1 %1446, %v1669_v6   ;;  %438 = vperm.xlu0 %1445, %v1667_v5  }
  0x5a   : > { %442 = vperm.xlu1 %1446, %v1675_v8   ;;  %446 = vperm.xlu0 %1445, %v1673_v7  }
  0x5e   : > { %450 = vperm.xlu1 %1446, %v1681_v10   ;;  %454 = vperm.xlu0 %1445, %v1679_v9  }
  0x62   : > { %458 = vperm.xlu1 %1446, %v1685_v12   ;;  %462 = vperm.xlu0 %1445, %v280_v11  }
  0x66   : > { %466 = vperm.xlu1 %1446, %v281_v14   ;;  %470 = vperm.xlu0 %1445, %v282_v13  }
  0x6a   : > { %474 = vperm.xlu1 %1446, %v283_v16   ;;  %478 = vperm.xlu0 %1445, %v284_v15  }
  0x6e   : > { %1447 = vset.pattern.permute.xlu1 %v1564_v18  ;;  %1448 = vset.pattern.permute.xlu0 %v1564_v18 }
  0x6f   : > { %564 = vperm.xlu1 %1447, %v1657_v2   ;;  %568 = vperm.xlu0 %1448, %v1663_v4  }
  0x73   : > { %572 = vperm.xlu1 %1447, %v1655_v1   ;;  %580 = vperm.xlu0 %1448, %v1669_v6  }
  0x77   : > { %576 = vperm.xlu1 %1447, %v1661_v3   ;;  %588 = vperm.xlu0 %1448, %v1675_v8  }
  0x7b   : > { %584 = vperm.xlu1 %1447, %v1667_v5   ;;  %596 = vperm.xlu0 %1448, %v1681_v10  }
  0x7f   : > { %592 = vperm.xlu1 %1447, %v1673_v7   ;;  %604 = vperm.xlu0 %1448, %v1685_v12  }
  0x83   : > { %600 = vperm.xlu1 %1447, %v1679_v9   ;;  %612 = vperm.xlu0 %1448, %v281_v14  }
  0x87   : > { %608 = vperm.xlu1 %1447, %v280_v11   ;;  %620 = vperm.xlu0 %1448, %v283_v16  }
  0x8b   : > { %616 = vperm.xlu1 %1447, %v282_v13   ;;  %1449 = vset.pattern.permute.xlu0 %v1565_v19 }
  0x8c   : > { %710 = vperm.xlu0 %1449, %v1657_v2  }
  0x8f   : > { %624 = vperm.xlu1 %1447, %v284_v15  }
  0x90   : > { %722 = vperm.xlu0 %1449, %v1661_v3  }
  0x93   : > { %1450 = vset.pattern.permute.xlu1 %v1565_v19 }
  0x94   : > { %714 = vperm.xlu1 %1450, %v1663_v4   ;;  %730 = vperm.xlu0 %1449, %v1667_v5  }
  0x98   : > { %718 = vperm.xlu1 %1450, %v1655_v1   ;;  %738 = vperm.xlu0 %1449, %v1673_v7  }
  0x9c   : > { %726 = vperm.xlu1 %1450, %v1669_v6   ;;  %746 = vperm.xlu0 %1449, %v1679_v9  }
  0xa0   : > { %734 = vperm.xlu1 %1450, %v1675_v8   ;;  %754 = vperm.xlu0 %1449, %v280_v11  }
  0xa4   : > { %742 = vperm.xlu1 %1450, %v1681_v10   ;;  %762 = vperm.xlu0 %1449, %v282_v13  }
  0xa8   : > { %750 = vperm.xlu1 %1450, %v1685_v12   ;;  %770 = vperm.xlu0 %1449, %v284_v15  }
  0xac   : > { %v299_v20 = vpop.permute.xlu1 %298  ;;  %758 = vperm.xlu1 %1450, %v281_v14   ;;  %v1721_v21 = vpop.permute.xlu0 %288 }
  0xad   : > { %v389_v61 = vmul.f32 %v1770_v49, %v299_v20  ;;  %v390_v62 = vmul.f32 %v1773_v50, %v299_v20 }
  0xb0   : > { %v1724_v22 = vpop.permute.xlu1 %303  ;;  %766 = vperm.xlu1 %1450, %v283_v16   ;;  %v294_v23 = vpop.permute.xlu0 %293 }
  0xb1   : > { %v387_v53 = vmul.f32 %v1770_v49, %v294_v23  ;;  %v388_v54 = vmul.f32 %v1773_v50, %v294_v23 }
  0xb4   : > { %v1726_v24 = vpop.permute.xlu1 %313  ;;  %v309_v25 = vpop.permute.xlu0 %308 }
  0xb5   : > { %v393_v5 = vmul.f32 %v1770_v49, %v309_v25  ;;  %v394_v6 = vmul.f32 %v1773_v50, %v309_v25 }
  0xb8   : > { %v1728_v26 = vpop.permute.xlu1 %323  ;;  %v319_v27 = vpop.permute.xlu0 %318 }
  0xb9   : > { %v397_v13 = vmul.f32 %v1770_v49, %v319_v27  ;;  %v398_v14 = vmul.f32 %v1773_v50, %v319_v27 }
  0xbc   : > { %v1730_v29 = vpop.permute.xlu1 %333  ;;  %v329_v30 = vpop.permute.xlu0 %328 }
  0xbd   : > { %v401_v23 = vmul.f32 %v1770_v49, %v329_v30  ;;  %v402_v25 = vmul.f32 %v1773_v50, %v329_v30 }
  0xc0   : > { %v1734_v32 = vpop.permute.xlu1 %343  ;;  %v339_v33 = vpop.permute.xlu0 %338 }
  0xc1   : > { %v405_v43 = vmul.f32 %v1770_v49, %v339_v33  ;;  %v406_v44 = vmul.f32 %v1773_v50, %v339_v33 }
  0xc4   : > { %v1747_v38 = vpop.permute.xlu1 %353  ;;  %v1749_v39 = vpop.permute.xlu0 %348 }
  0xc8   : > { %v1759_v45 = vpop.permute.xlu1 %363  ;;  %v1761_v46 = vpop.permute.xlu0 %358 }
  0xcd   : > { %v423_v51 = vpop.permute.xlu1 %422  ;;  %v1775_v52 = vpop.permute.xlu0 %418 }
  0xce   : > { %v501_v55 = vmul.f32 %v1764_v47, %v423_v51  ;;  %v502_v56 = vmul.f32 %v1767_v48, %v423_v51 }
  0xd0   : > { %v1781_v57 = vadd.f32 %v501_v55, %v387_v53  ;;  %v1783_v58 = vadd.f32 %v502_v56, %v388_v54 }
  0xd1   : > { %v427_v59 = vpop.permute.xlu1 %426  ;;  %v1785_v60 = vpop.permute.xlu0 %430 }
  0xd2   : > { %v503_v63 = vmul.f32 %v1764_v47, %v427_v59  ;;  %v504_v0 = vmul.f32 %v1767_v48, %v427_v59  ;;  %v409_v59 = vmul.f32 %v1770_v49, %v1749_v39 }
  0xd4   : > { %v1791_v1 = vadd.f32 %v503_v63, %v389_v61  ;;  %v1793_v2 = vadd.f32 %v504_v0, %v390_v62  ;;  %v410_v61 = vmul.f32 %v1773_v50, %v1749_v39 }
  0xd5   : > { %v435_v3 = vpop.permute.xlu1 %434  ;;  %v1795_v4 = vpop.permute.xlu0 %438 }
  0xd6   : > { %v507_v7 = vmul.f32 %v1764_v47, %v435_v3  ;;  %v508_v8 = vmul.f32 %v1767_v48, %v435_v3 }
  0xd8   : > { %v1801_v9 = vadd.f32 %v507_v7, %v393_v5  ;;  %v1803_v10 = vadd.f32 %v508_v8, %v394_v6  ;;  %v413_v6 = vmul.f32 %v1770_v49, %v1761_v46  ;;  %v414_v7 = vmul.f32 %v1773_v50, %v1761_v46 }
  0xd9   : > { %v443_v11 = vpop.permute.xlu1 %442  ;;  %v1805_v12 = vpop.permute.xlu0 %446 }
  0xda   : > { %v511_v15 = vmul.f32 %v1764_v47, %v443_v11  ;;  %v512_v16 = vmul.f32 %v1767_v48, %v443_v11 }
  0xdc   : > { %v1811_v17 = vadd.f32 %v511_v15, %v397_v13  ;;  %v1813_v18 = vadd.f32 %v512_v16, %v398_v14  ;;  %v629_v16 = vsub.s32 2, %v1732_v31 }
  0xdd   : > { %v451_v19 = vpop.permute.xlu1 %450  ;;  %v1815_v20 = vpop.permute.xlu0 %454 }
  0xde   : > { %v515_v28 = vmul.f32 %v1764_v47, %v451_v19  ;;  %v516_v27 = vmul.f32 %v1767_v48, %v451_v19  ;;  %v633_v19 = vsub.s32 6, %v1732_v31 }
  0xe0   : > { %v1821_v35 = vadd.f32 %v515_v28, %v401_v23  ;;  %v1823_v37 = vadd.f32 %v516_v27, %v402_v25  ;;  %v775_v25 = vsub.s32 3, %v1732_v31  ;;  %v779_v28 = vsub.s32 7, %v1732_v31 }
  0xe1   : > { %v459_v41 = vpop.permute.xlu1 %458  ;;  %v1825_v42 = vpop.permute.xlu0 %462  ;;  %v630_v27 = vrot.slane %v1751_v40, %v629_v16 }
  0xe2   : > { %2327 = vst [vmem:[#allocation11_spill] sm:$0xff] %v1821_v35  ;;  %2328 = vst [vmem:[#allocation12_spill] sm:$0xff] %v1823_v37  ;;  %v519_v51 = vmul.f32 %v1764_v47, %v459_v41  ;;  %v520_v53 = vmul.f32 %v1767_v48, %v459_v41  ;;  %v634_v41 = vrot.slane %v1751_v40, %v633_v19 }
  0xe3   : > { %v395_v19 = vmul.f32 %v1770_v49, %v1726_v24 }
  0xe4   : > { %v1832_v30 = vadd.f32 %v519_v51, %v405_v43  ;;  %v1834_v54 = vadd.f32 %v520_v53, %v406_v44  ;;  %v776_v51 = vrot.slane %v1751_v40, %v775_v25  ;;  %v780_v53 = vrot.slane %v1751_v40, %v779_v28 }
  0xe5   : > { %v467_v55 = vpop.permute.xlu1 %466  ;;  %v1836_v56 = vpop.permute.xlu0 %470  ;;  %v1885_v31 = vrot.slane %v634_v41, %v629_v16  ;;  %v404_v28 = vmul.f32 %v1773_v50, %v1730_v29  ;;  %v506_v41 = vmul.f32 %v1767_v48, %v1785_v60 }
  0xe6   : > { %2329 = vst [vmem:[#allocation13_spill] sm:$0xff] %v1832_v30  ;;  %2330 = vst [vmem:[#allocation14_spill] sm:$0xff] %v1834_v54  ;;  %v523_v33 = vmul.f32 %v1764_v47, %v467_v55  ;;  %v524_v62 = vmul.f32 %v1767_v48, %v467_v55  ;;  %v855_v55 = vld [vmem:[%s265_s27] sm:$0x3]  ;;  %s1469_s27 = scalar_lea.vmem %s1468_s22, 2048 }
  0xe7   : > { %v1900_v40 = vrot.slane %v855_v55, %v1744_v36  ;;  %v400_v36 = vmul.f32 %v1773_v50, %v1728_v26  ;;  %p1471_p8 = scmp.lt.s32.totalorder %s1469_s27, %s1463_s20 }
  0xe8   : > { %v1844_v63 = vadd.f32 %v523_v33, %v409_v59  ;;  %v1846_v0 = vadd.f32 %v524_v62, %v410_v61  ;;  %v1883_v59 = vrot.slane %v630_v27, %v629_v16  ;;  %v1891_v62 = vrot.slane %v776_v51, %v775_v25 }
  0xe9   : > { %v475_v3 = vpop.permute.xlu1 %474  ;;  %v1848_v5 = vpop.permute.xlu0 %478  ;;  %2337 = vst [vmem:[#allocation21_spill] sm:$0xff] %v1900_v40  ;;  %v392_v16 = vmul.f32 %v1773_v50, %v1724_v22  ;;  %v500_v27 = vmul.f32 %v1767_v48, %v1775_v52  ;;  %v416_v40 = vmul.f32 %v1773_v50, %v1759_v45  ;;  %p1472_p9 = por %p1471_p8, %p1470_p7 }
  0xea   : > { %2331 = vst [vmem:[#allocation15_spill] sm:$0xff] %v1844_v63  ;;  %2332 = vst [vmem:[#allocation16_spill] sm:$0xff] %v1846_v0  ;;  %v527_v8 = vmul.f32 %v1764_v47, %v475_v3  ;;  %v528_v39 = vmul.f32 %v1767_v48, %v475_v3  ;;  %v1893_v3 = vrot.slane %v780_v53, %v775_v25 }
  0xeb   : > { %2335 = vst [vmem:[#allocation19_spill] sm:$0xff] %v1891_v62  ;;  %v396_v25 = vmul.f32 %v1773_v50, %v1726_v24  ;;  %v505_v24 = vmul.f32 %v1764_v47, %v1785_v60  ;;  %v407_v53 = vmul.f32 %v1770_v49, %v1734_v32  ;;  %v412_v60 = vmul.f32 %v1773_v50, %v1747_v38  ;;  %p1473_p12 = pnand %p1472_p9, %p1466_p6 }
  0xec   : > { %v1856_v11 = vadd.f32 %v527_v8, %v413_v6  ;;  %v1858_v13 = vadd.f32 %v528_v39, %v414_v7  ;;  %2336 = vst [vmem:[#allocation20_spill] sm:$0xff] %v1893_v3  ;;  %v385_v6 = vmul.f32 %v1770_v49, %v1721_v21  ;;  %v386_v7 = vmul.f32 %v1773_v50, %v1721_v21 }
  0xed   : > { %v1903_v8 = vrot.slane %v855_v55, %v1740_v34  ;;  %v391_v39 = vmul.f32 %v1770_v49, %v1724_v22  ;;  %v399_v21 = vmul.f32 %v1770_v49, %v1728_v26  ;;  %v403_v34 = vmul.f32 %v1770_v49, %v1730_v29 }
  0xee   : > { %2333 = vst [vmem:[#allocation17_spill] sm:$0xff] %v1856_v11  ;;  %2334 = vst [vmem:[#allocation18_spill] sm:$0xff] %v1858_v13  ;;  %v1860_v14 = vpop.permute.xlu1 %564  ;;  %v1862_v15 = vpop.permute.xlu0 %568  ;;  %v499_v22 = vmul.f32 %v1764_v47, %v1775_v52  ;;  %v408_v29 = vmul.f32 %v1773_v50, %v1734_v32  ;;  %v509_v55 = vmul.f32 %v1764_v47, %v1795_v4 }
  0xef   : > { %2338 = vst [vmem:[#allocation22_spill] sm:$0xff] %v1903_v8  ;;  %v510_v52 = vmul.f32 %v1767_v48, %v1795_v4  ;;  %v411_v13 = vmul.f32 %v1770_v49, %v1747_v38  ;;  %v513_v11 = vmul.f32 %v1764_v47, %v1805_v12  ;;  %v514_v8 = vmul.f32 %v1767_v48, %v1805_v12 }
  0xf0   : > { %v415_v32 = vmul.f32 %v1770_v49, %v1759_v45  ;;  %v517_v4 = vmul.f32 %v1764_v47, %v1815_v20  ;;  %v518_v0 = vmul.f32 %v1767_v48, %v1815_v20  ;;  %v531_v63 = vadd.f32 %v499_v22, %v385_v6 }
  0xf1   : > { %v532_v38 = vadd.f32 %v500_v27, %v386_v7  ;;  %v537_v54 = vadd.f32 %v505_v24, %v391_v39  ;;  %v538_v30 = vadd.f32 %v506_v41, %v392_v16  ;;  %v541_v12 = vadd.f32 %v509_v55, %v395_v19 }
  0xf2   : > { %v1866_v23 = vpop.permute.xlu1 %572  ;;  %v1868_v46 = vpop.permute.xlu0 %580  ;;  %v542_v3 = vadd.f32 %v510_v52, %v396_v25  ;;  %v521_v49 = vmul.f32 %v1764_v47, %v1825_v42  ;;  %v522_v45 = vmul.f32 %v1767_v48, %v1825_v42  ;;  %v545_v50 = vadd.f32 %v513_v11, %v399_v21 }
  0xf3   : > { %v546_v62 = vadd.f32 %v514_v8, %v400_v36  ;;  %v525_v20 = vmul.f32 %v1764_v47, %v1836_v56  ;;  %v526_v6 = vmul.f32 %v1767_v48, %v1836_v56  ;;  %v1969_v7 = vadd.f32 %v517_v4, %v403_v34 }
  0xf4   : > { %v1971_v39 = vadd.f32 %v518_v0, %v404_v28  ;;  %v529_v16 = vmul.f32 %v1764_v47, %v1848_v5  ;;  %v530_v19 = vmul.f32 %v1767_v48, %v1848_v5  ;;  %v645_v42 = vmul.f32 %v1883_v59, %v1860_v14 }
  0xf5   : > { %v646_v11 = vmul.f32 %v1885_v31, %v1860_v14  ;;  %v647_v8 = vmul.f32 %v1883_v59, %v1862_v15  ;;  %v648_v56 = vmul.f32 %v1885_v31, %v1862_v15  ;;  %v1989_v47 = vadd.f32 %v521_v49, %v407_v53 }
  0xf6   : > { %v1877_v43 = vpop.permute.xlu1 %576  ;;  %v1879_v44 = vpop.permute.xlu0 %588  ;;  %v1991_v21 = vadd.f32 %v522_v45, %v408_v29  ;;  %v649_v48 = vmul.f32 %v1883_v59, %v1866_v23  ;;  %v650_v5 = vmul.f32 %v1885_v31, %v1866_v23  ;;  %v1997_v14 = vadd.f32 %v525_v20, %v411_v13  ;;  %v2340_v45 = vld [vmem:[#allocation20_spill] sm:$0xff] }
  0xf7   : > { %v1999_v36 = vadd.f32 %v526_v6, %v412_v60  ;;  %v653_v15 = vmul.f32 %v1883_v59, %v1868_v46  ;;  %v654_v34 = vmul.f32 %v1885_v31, %v1868_v46  ;;  %v2005_v28 = vadd.f32 %v529_v16, %v415_v32 }
  0xf8   : > { %v2007_v22 = vadd.f32 %v530_v19, %v416_v40  ;;  %v651_v27 = vmul.f32 %v1883_v59, %v1877_v43  ;;  %v652_v23 = vmul.f32 %v1885_v31, %v1877_v43  ;;  %v677_v13 = vadd.f32 %v645_v42, %v531_v63  ;;  %v2341_v42 = vld [vmem:[#allocation11_spill] sm:$0xff] }
  0xf9   : > { %v678_v24 = vadd.f32 %v646_v11, %v532_v38  ;;  %v679_v41 = vadd.f32 %v647_v8, %v1781_v57  ;;  %v680_v53 = vadd.f32 %v648_v56, %v1783_v58  ;;  %v2018_v46 = vadd.f32 %v649_v48, %v1791_v1  ;;  %v2342_v11 = vld [vmem:[#allocation12_spill] sm:$0xff]  ;;  %v2343_v48 = vld [vmem:[#allocation13_spill] sm:$0xff] }
  0xfa   : > { %v1887_v61 = vpop.permute.xlu1 %584  ;;  %v1889_v33 = vpop.permute.xlu0 %596  ;;  %v2021_v40 = vadd.f32 %v650_v5, %v1793_v2  ;;  %v657_v55 = vmul.f32 %v1883_v59, %v1879_v44  ;;  %v658_v43 = vmul.f32 %v1885_v31, %v1879_v44  ;;  %v2028_v52 = vadd.f32 %v653_v15, %v1801_v9 }
  0xfb   : > { %v2031_v57 = vadd.f32 %v654_v34, %v1803_v10  ;;  %v655_v58 = vmul.f32 %v1883_v59, %v1887_v61  ;;  %v656_v1 = vmul.f32 %v1885_v31, %v1887_v61  ;;  %v683_v2 = vadd.f32 %v651_v27, %v537_v54 }
  0xfc   : > { %v684_v60 = vadd.f32 %v652_v23, %v538_v30  ;;  %v661_v32 = vmul.f32 %v1883_v59, %v1889_v33  ;;  %v662_v44 = vmul.f32 %v1885_v31, %v1889_v33  ;;  %v2052_v30 = vadd.f32 %v657_v55, %v1811_v17  ;;  %v2339_v33 = vld [vmem:[#allocation19_spill] sm:$0xff] }
  0xfd   : > { %v2055_v38 = vadd.f32 %v658_v43, %v1813_v18  ;;  %v688_v16 = vadd.f32 %v656_v1, %v542_v3  ;;  %v2346_v1 = vld [vmem:[#allocation16_spill] sm:$0xff] }
  0xfe   : > { %v1929_v51 = vpop.permute.xlu1 %592  ;;  %v1931_v26 = vpop.permute.xlu0 %604  ;;  %v2064_v17 = vadd.f32 %v661_v32, %v2341_v42  ;;  %v2067_v18 = vadd.f32 %v662_v44, %v2342_v11 }
  0xff   : > { %v659_v9 = vmul.f32 %v1883_v59, %v1929_v51  ;;  %v660_v10 = vmul.f32 %v1885_v31, %v1929_v51  ;;  %v665_v4 = vmul.f32 %v1883_v59, %v1931_v26  ;;  %v666_v61 = vmul.f32 %v1885_v31, %v1931_v26 }
 0x100   : > { %v687_v51 = vadd.f32 %v655_v58, %v541_v12 }
 0x101   : > { %v2073_v3 = vadd.f32 %v659_v9, %v545_v50  ;;  %v2075_v56 = vadd.f32 %v660_v10, %v546_v62  ;;  %v2078_v5 = vadd.f32 %v665_v4, %v2343_v48 }
 0x102   : > { %v1957_v37 = vpop.permute.xlu1 %600  ;;  %v1959_v35 = vpop.permute.xlu0 %612 }
 0x103   : > { %v663_v19 = vmul.f32 %v1883_v59, %v1957_v37  ;;  %v664_v26 = vmul.f32 %v1885_v31, %v1957_v37  ;;  %v669_v8 = vmul.f32 %v1883_v59, %v1959_v35  ;;  %v670_v12 = vmul.f32 %v1885_v31, %v1959_v35  ;;  %v2344_v37 = vld [vmem:[#allocation14_spill] sm:$0xff] }
 0x104   : > { %v2081_v15 = vadd.f32 %v666_v61, %v2344_v37  ;;  %v2347_v61 = vld [vmem:[#allocation21_spill] sm:$0xff] }
 0x105   : > { %v2089_v62 = vadd.f32 %v663_v19, %v1969_v7  ;;  %v2092_v50 = vadd.f32 %v664_v26, %v1971_v39  ;;  %v2100_v32 = vadd.f32 %v670_v12, %v2346_v1 }
 0x106   : > { %v1985_v0 = vpop.permute.xlu1 %608  ;;  %v1987_v25 = vpop.permute.xlu0 %620 }
 0x107   : > { %v667_v7 = vmul.f32 %v1883_v59, %v1985_v0  ;;  %v668_v39 = vmul.f32 %v1885_v31, %v1985_v0  ;;  %v2117_v0 = vmul.f32 %v1883_v59, %v1987_v25 }
 0x109   : > { %v700_v1 = vadd.f32 %v668_v39, %v1991_v21 }
 0x10a   : > { %v2015_v29 = vpop.permute.xlu1 %616 }
 0x10b   : > { %v711_v63 = vpop.permute.xlu0 %710 }
 0x10c   : > { %v791_v49 = vmul.f32 %v2339_v33, %v711_v63  ;;  %v792_v20 = vmul.f32 %v2340_v45, %v711_v63 }
 0x10e   : > { %v2049_v54 = vpop.permute.xlu1 %624  ;;  %v823_v34 = vadd.f32 %v791_v49, %v677_v13  ;;  %v824_v27 = vadd.f32 %v792_v20, %v678_v24  ;;  %v2345_v24 = vld [vmem:[#allocation15_spill] sm:$0xff]  ;;  %v2348_v20 = vld [vmem:[#allocation22_spill] sm:$0xff] }
 0x10f   : > { %v723_v6 = vpop.permute.xlu0 %722  ;;  %v2097_v58 = vadd.f32 %v669_v8, %v2345_v24 }
 0x110   : > { %v797_v23 = vmul.f32 %v2339_v33, %v723_v6  ;;  %v798_v55 = vmul.f32 %v2340_v45, %v723_v6  ;;  %v867_v49 = vadd.f32 %v2347_v61, %v823_v34  ;;  %v868_v6 = vadd.f32 %v2348_v20, %v824_v27 }
 0x112   : > { %v829_v19 = vadd.f32 %v797_v23, %v683_v2  ;;  %v830_v26 = vadd.f32 %v798_v55, %v684_v60 }
 0x113   : > { %v715_v43 = vpop.permute.xlu1 %714  ;;  %v731_v35 = vpop.permute.xlu0 %730 }
 0x114   : > { %v793_v63 = vmul.f32 %v2339_v33, %v715_v43  ;;  %v794_v13 = vmul.f32 %v2340_v45, %v715_v43  ;;  %v801_v44 = vmul.f32 %v2339_v33, %v731_v35  ;;  %v802_v9 = vmul.f32 %v2340_v45, %v731_v35 }
 0x115   : > { %v873_v55 = vadd.f32 %v2347_v61, %v829_v19  ;;  %v874_v43 = vadd.f32 %v2348_v20, %v830_v26 }
 0x116   : > { %v825_v10 = vadd.f32 %v793_v63, %v679_v41  ;;  %v826_v4 = vadd.f32 %v794_v13, %v680_v53  ;;  %v2121_v41 = vmul.f32 %v1885_v31, %v1987_v25  ;;  %v833_v53 = vadd.f32 %v801_v44, %v687_v51 }
 0x117   : > { %v719_v42 = vpop.permute.xlu1 %718  ;;  %v739_v11 = vpop.permute.xlu0 %738  ;;  %v834_v2 = vadd.f32 %v802_v9, %v688_v16  ;;  %v699_v16 = vadd.f32 %v667_v7, %v1989_v47 }
 0x118   : > { %v869_v8 = vadd.f32 %v2347_v61, %v825_v10  ;;  %v870_v12 = vadd.f32 %v2348_v20, %v826_v4  ;;  %v795_v48 = vmul.f32 %v2339_v33, %v719_v42  ;;  %v796_v37 = vmul.f32 %v2340_v45, %v719_v42 }
 0x119   : > { %v805_v35 = vmul.f32 %v2339_v33, %v739_v11  ;;  %v806_v63 = vmul.f32 %v2340_v45, %v739_v11  ;;  %v877_v44 = vadd.f32 %v2347_v61, %v833_v53  ;;  %v878_v9 = vadd.f32 %v2348_v20, %v834_v2 }
 0x11a   : > { %v1301_v60 = vpack.c.bf16 %v869_v8, %v867_v49  ;;  %v1341_v34 = vpack.c.bf16 %v870_v12, %v868_v6  ;;  %v827_v27 = vadd.f32 %v795_v48, %v2018_v46  ;;  %v828_v23 = vadd.f32 %v796_v37, %v2021_v40 }
 0x11b   : > { %v727_v13 = vpop.permute.xlu1 %726  ;;  %v747_v24 = vpop.permute.xlu0 %746  ;;  %v837_v19 = vadd.f32 %v805_v35, %v2073_v3  ;;  %v838_v26 = vadd.f32 %v806_v63, %v2075_v56  ;;  %v671_v3 = vmul.f32 %v1883_v59, %v2015_v29  ;;  %v672_v56 = vmul.f32 %v1885_v31, %v2015_v29 }
 0x11c   : > { %1302 = vst [vmem:[%s2129_s9] sm:$0xff] %v1301_v60   ;;  %1342 = vst [vmem:[%s2132_s10] sm:$0xff] %v1341_v34   ;;  %v871_v25 = vadd.f32 %v2347_v61, %v827_v27  ;;  %v872_v46 = vadd.f32 %v2348_v20, %v828_v23  ;;  %v799_v40 = vmul.f32 %v2339_v33, %v727_v13 }
 0x11d   : > { %v800_v51 = vmul.f32 %v2340_v45, %v727_v13  ;;  %v809_v42 = vmul.f32 %v2339_v33, %v747_v24  ;;  %v810_v47 = vmul.f32 %v2340_v45, %v747_v24  ;;  %v881_v60 = vadd.f32 %v2347_v61, %v837_v19 }
 0x11e   : > { %v1306_v10 = vpack.c.bf16 %v873_v55, %v871_v25  ;;  %v1346_v4 = vpack.c.bf16 %v874_v43, %v872_v46  ;;  %v831_v49 = vadd.f32 %v799_v40, %v2028_v52  ;;  %v882_v34 = vadd.f32 %v2348_v20, %v838_v26 }
 0x11f   : > { %v832_v6 = vadd.f32 %v800_v51, %v2031_v57  ;;  %v735_v7 = vpop.permute.xlu1 %734  ;;  %v755_v21 = vpop.permute.xlu0 %754  ;;  %v841_v27 = vadd.f32 %v809_v42, %v2089_v62  ;;  %v842_v23 = vadd.f32 %v810_v47, %v2092_v50  ;;  %v703_v63 = vadd.f32 %v671_v3, %v1997_v14 }
 0x120   : > { %1378 = vst [vmem:[%s2129_s9 + $0x8] sm:$0xff] %v1306_v10   ;;  %1385 = vst [vmem:[%s2132_s10 + $0x8] sm:$0xff] %v1346_v4   ;;  %v875_v39 = vadd.f32 %v2347_v61, %v831_v49  ;;  %v803_v52 = vmul.f32 %v2339_v33, %v735_v7  ;;  %v804_v57 = vmul.f32 %v2340_v45, %v735_v7 }
 0x121   : > { %v876_v11 = vadd.f32 %v2348_v20, %v832_v6  ;;  %v813_v8 = vmul.f32 %v2339_v33, %v755_v21  ;;  %v814_v12 = vmul.f32 %v2340_v45, %v755_v21  ;;  %v704_v62 = vadd.f32 %v672_v56, %v1999_v36  ;;  %v2350_v56 = vld [vmem:[#allocation18_spill] sm:$0xff] }
 0x122   : > { %v1311_v48 = vpack.c.bf16 %v877_v44, %v875_v39  ;;  %v835_v53 = vadd.f32 %v803_v52, %v2052_v30  ;;  %v836_v2 = vadd.f32 %v804_v57, %v2055_v38  ;;  %v885_v51 = vadd.f32 %v2347_v61, %v841_v27 }
 0x123   : > { %v1351_v37 = vpack.c.bf16 %v878_v9, %v876_v11  ;;  %v743_v55 = vpop.permute.xlu1 %742  ;;  %v763_v29 = vpop.permute.xlu0 %762  ;;  %v845_v13 = vadd.f32 %v813_v8, %v699_v16  ;;  %v846_v50 = vadd.f32 %v814_v12, %v700_v1  ;;  %v886_v44 = vadd.f32 %v2348_v20, %v842_v23 }
 0x124   : > { %1379 = vst [vmem:[%s2129_s9 + $0x10] sm:$0xff] %v1311_v48   ;;  %v879_v43 = vadd.f32 %v2347_v61, %v835_v53  ;;  %v880_v35 = vadd.f32 %v2348_v20, %v836_v2  ;;  %v807_v30 = vmul.f32 %v2339_v33, %v743_v55  ;;  %v808_v38 = vmul.f32 %v2340_v45, %v743_v55 }
 0x125   : > { %1386 = vst [vmem:[%s2132_s10 + $0x10] sm:$0xff] %v1351_v37   ;;  %v817_v9 = vmul.f32 %v2339_v33, %v763_v29  ;;  %v818_v10 = vmul.f32 %v2340_v45, %v763_v29  ;;  %v675_v1 = vmul.f32 %v1883_v59, %v2049_v54  ;;  %v676_v49 = vmul.f32 %v1885_v31, %v2049_v54 }
 0x126   : > { %v1316_v24 = vpack.c.bf16 %v881_v60, %v879_v43  ;;  %v1356_v25 = vpack.c.bf16 %v882_v34, %v880_v35  ;;  %v839_v46 = vadd.f32 %v807_v30, %v2064_v17  ;;  %v840_v40 = vadd.f32 %v808_v38, %v2067_v18 }
 0x127   : > { %v751_v4 = vpop.permute.xlu1 %750  ;;  %v771_v18 = vpop.permute.xlu0 %770  ;;  %v889_v6 = vadd.f32 %v2347_v61, %v845_v13  ;;  %v890_v19 = vadd.f32 %v2348_v20, %v846_v50  ;;  %v849_v21 = vadd.f32 %v817_v9, %v703_v63  ;;  %v850_v39 = vadd.f32 %v818_v10, %v704_v62 }
 0x128   : > { %1380 = vst [vmem:[%s2129_s9 + $0x18] sm:$0xff] %v1316_v24   ;;  %1387 = vst [vmem:[%s2132_s10 + $0x18] sm:$0xff] %v1356_v25   ;;  %v883_v14 = vadd.f32 %v2347_v61, %v839_v46  ;;  %v884_v36 = vadd.f32 %v2348_v20, %v840_v40  ;;  %v811_v16 = vmul.f32 %v2339_v33, %v751_v4 }
 0x129   : > { %v812_v17 = vmul.f32 %v2340_v45, %v751_v4  ;;  %v821_v11 = vmul.f32 %v2339_v33, %v771_v18  ;;  %v822_v52 = vmul.f32 %v2340_v45, %v771_v18  ;;  %v706_v8 = vadd.f32 %v2121_v41, %v2350_v56 }
 0x12a   : > { %v1321_v26 = vpack.c.bf16 %v885_v51, %v883_v14  ;;  %v1361_v42 = vpack.c.bf16 %v886_v44, %v884_v36  ;;  %v843_v47 = vadd.f32 %v811_v16, %v2078_v5  ;;  %v707_v12 = vadd.f32 %v675_v1, %v2005_v28 }
 0x12b   : > { %v844_v7 = vadd.f32 %v812_v17, %v2081_v15  ;;  %v759_v59 = vpop.permute.xlu1 %758  ;;  %v2349_v15 = vld [vmem:[#allocation17_spill] sm:$0xff]  ;;  %v708_v48 = vadd.f32 %v676_v49, %v2007_v22  ;;  %v893_v34 = vadd.f32 %v2347_v61, %v849_v21  ;;  %v894_v27 = vadd.f32 %v2348_v20, %v850_v39 }
 0x12c   : > { %1381 = vst [vmem:[%s2129_s9 + $0x20] sm:$0xff] %v1321_v26   ;;  %1388 = vst [vmem:[%s2132_s10 + $0x20] sm:$0xff] %v1361_v42   ;;  %v887_v31 = vadd.f32 %v2347_v61, %v843_v47  ;;  %v815_v57 = vmul.f32 %v2339_v33, %v759_v59  ;;  %v816_v5 = vmul.f32 %v2340_v45, %v759_v59 }
 0x12d   : > { %v888_v54 = vadd.f32 %v2348_v20, %v844_v7  ;;  %v705_v3 = vadd.f32 %v2117_v0, %v2349_v15  ;;  %v853_v0 = vadd.f32 %v821_v11, %v707_v12  ;;  %v854_v23 = vadd.f32 %v822_v52, %v708_v48 }
 0x12e   : > { %v1326_v37 = vpack.c.bf16 %v889_v6, %v887_v31  ;;  %v847_v2 = vadd.f32 %v815_v57, %v2097_v58  ;;  %v848_v60 = vadd.f32 %v816_v5, %v2100_v32 }
 0x12f   : > { %v1366_v53 = vpack.c.bf16 %v890_v19, %v888_v54  ;;  %v767_v41 = vpop.permute.xlu1 %766  ;;  %v897_v30 = vadd.f32 %v2347_v61, %v853_v0  ;;  %v898_v38 = vadd.f32 %v2348_v20, %v854_v23 }
 0x130   : > { %1382 = vst [vmem:[%s2129_s9 + $0x28] sm:$0xff] %v1326_v37   ;;  %v891_v28 = vadd.f32 %v2347_v61, %v847_v2  ;;  %v892_v22 = vadd.f32 %v2348_v20, %v848_v60  ;;  %v819_v58 = vmul.f32 %v2339_v33, %v767_v41  ;;  %v820_v32 = vmul.f32 %v2340_v45, %v767_v41 }
 0x131   : > { %1389 = vst [vmem:[%s2132_s10 + $0x28] sm:$0xff] %v1366_v53  }
 0x132   : > { %v1331_v55 = vpack.c.bf16 %v893_v34, %v891_v28  ;;  %v1371_v29 = vpack.c.bf16 %v894_v27, %v892_v22  ;;  %v851_v43 = vadd.f32 %v819_v58, %v705_v3  ;;  %v852_v35 = vadd.f32 %v820_v32, %v706_v8 }
 0x134   : > { %1383 = vst [vmem:[%s2129_s9 + $0x30] sm:$0xff] %v1331_v55   ;;  %1390 = vst [vmem:[%s2132_s10 + $0x30] sm:$0xff] %v1371_v29   ;;  %v895_v33 = vadd.f32 %v2347_v61, %v851_v43  ;;  %v896_v45 = vadd.f32 %v2348_v20, %v852_v35 }
 0x136   : > { %v1336_v63 = vpack.c.bf16 %v897_v30, %v895_v33  ;;  %v1376_v62 = vpack.c.bf16 %v898_v38, %v896_v45 }
 0x138   : > { %1384 = vst [vmem:[%s2129_s9 + $0x38] sm:$0xff] %v1336_v63   ;;  %1391 = vst [vmem:[%s2132_s10 + $0x38] sm:$0xff] %v1376_v62  }
 0x139   : > { %1476 = shalt.err (!%p1473_p12)
}
 0x13a   : > { %s1477_s30 = scalar_lea.hbm %s2231_s16, 1024  ;;  %s1481_s11 = scalar_lea.hbm %s2319_s4, 3072 }
 0x13b   : > { %p1478_p13 = scmp.ne.s32.totalorder %s2231_s16, %s1477_s30  ;;  %p1482_p2 = scmp.lt.u32.totalorder %s2231_s16, %s2319_s4 }
 0x13c   : > { %p1483_p3 = scmp.lt.u32.totalorder %s1481_s11, %s1477_s30  ;;  %p1485_p5 = scmp.lt.u32.totalorder %s1477_s30, %s2231_s16 }
 0x13d   : > { %p1479_p0 = pnand %p1478_p13, %p1641_p10 }
 0x13e   : > { %p1484_p4 = por %p1483_p3, %p1482_p2 }
 0x13f   : > { %p1480_p1 = pneg %p1479_p0 }
 0x140   : > { %p1486_p6 = por %p1485_p5, %p1484_p4 }
 0x142   : > { %p1487_p7 = pnand %p1486_p6, %p1480_p1 }
 0x144   : > { %1490 = shalt.err (!%p1487_p7)
}
 0x145   : > { %s1567_s26 = smov 64   ;;  %s1568_s17 = smov 4  }
 0x146   : > { %1392 = dma.vmem_to_hbm [thread:$0]  (%p1641_p10), %s2233_s12, 1024, %s2231_s16, %s1060_s19, %s1567_s26, %s1567_s26, %s1568_s17  }
 0x147   : > { %s1065_s20 = scalar_lea.sflag [#allocation7], %s2086_s29  ;;  %s1491_s21 = scalar_lea.vmem %s2240_s13, 1024 }
 0x148   : > { %p1492_p8 = scmp.ne.s32.totalorder %s2240_s13, %s1491_s21  ;;  %s1569_s22 = smov [#allocation6]  }
 0x149   : > { %s1495_s27 = sshll.u32 %s1569_s22, 4  ;;  %s1496_s27 = int_to_ptr.vmem [resolvable:$false] %s1495_s27 }
 0x14a   : > { %p1493_p9 = pnand %p1492_p8, %p1641_p10  ;;  %s1497_s30 = scalar_lea.vmem %s1496_s27, 2048 }
 0x14b   : > { %p1498_p13 = scmp.lt.s32.totalorder %s2240_s13, %s1496_s27  ;;  %p1499_p0 = scmp.lt.s32.totalorder %s1497_s30, %s1491_s21 }
 0x14c   : > { %p1494_p12 = pneg %p1493_p9 }
 0x14d   : > { %p1500_p1 = por %p1499_p0, %p1498_p13 }
 0x14f   : > { %p1501_p2 = pnand %p1500_p1, %p1494_p12 }
 0x151   : > { %1504 = shalt.err (!%p1501_p2)
}
 0x152   : > { %s1505_s12 = scalar_lea.hbm %s2238_s18, 1024  ;;  %s1509_s9 = scalar_lea.hbm %s2320_s5, 3072 }
 0x153   : > { %p1506_p3 = scmp.ne.s32.totalorder %s2238_s18, %s1505_s12  ;;  %p1510_p6 = scmp.lt.u32.totalorder %s2238_s18, %s2320_s5 }
 0x154   : > { %p1511_p7 = scmp.lt.u32.totalorder %s1509_s9, %s1505_s12  ;;  %p1513_p9 = scmp.lt.u32.totalorder %s1505_s12, %s2238_s18 }
 0x155   : > { %p1507_p4 = pnand %p1506_p3, %p1641_p10 }
 0x156   : > { %p1512_p8 = por %p1511_p7, %p1510_p6 }
 0x157   : > { %p1508_p5 = pneg %p1507_p4 }
 0x158   : > { %p1514_p12 = por %p1513_p9, %p1512_p8 }
 0x15a   : > { %p1515_p13 = pnand %p1514_p12, %p1508_p5 }
 0x15c   : > { %1518 = shalt.err (!%p1515_p13)
}
 0x15d   : > { %1393 = dma.vmem_to_hbm [thread:$0]  (%p1641_p10), %s2240_s13, 1024, %s2238_s18, %s1065_s20, %s1567_s26, %s1567_s26, %s1568_s17  }
 0x15e PF: > { %p1403_p0 = scmp.ge.s32.totalorder %s1559_s25, 2  ;;  %s1109_s14 = sand.u32 1, %s1547_s23  }
 0x15f   : > { %s1110_s15 = scalar_lea.sflag [#allocation5], %s1109_s14 }
 0x160   : > { %p1397_p1 = pnand %p1403_p0, %p1645_p11 }
 0x162   : > { %1538 = dma.done.wait (!%p1397_p1), %s1110_s15, 1024  }
 0x163   : > { %1540 = vsyncadd (!%p1397_p1), %s1110_s15, 4294966272  ;;  %s1119_s7 = scalar_lea.sflag [#allocation7], %s1109_s14 }
 0x164   : > { %1542 = dma.done.wait (!%p1397_p1), %s1119_s7, 1024  }
 0x165   : > { %1544 = vsyncadd (!%p1397_p1), %s1119_s7, 4294966272  ;;  %p25_p10 = scmp.ge.s32.totalorder %s1628_s28, 5   ;;  %s2351_s23 = smov %s1551_s0 }
 0x166   : > { %s2352_s0 = smov %s1555_s24  ;;  %s2353_s24 = smov %s1639_s6 }
 0x167   : > { %s2354_s25 = smov %s1628_s28  ;;  %27 = sbr.rel (!%p25_p10) target bundleno = 20 (0x14), region = 90 }
 0x16e   :  { %1124 = vsyncpa [#allocation5], 1 }
 0x16f   :  { %1126 = vsyncpa [#allocation5 + $0x1], 1 }
 0x170   :  { %1127 = vsyncpa [#allocation7], 1 }
 0x171   :  { %1129 = vsyncpa [#allocation7 + $0x1], 1 }

</bundles_post_ra>
